<compile_context>
chip_gen: v6e
topology: v6e:2x2x1
jax: 0.10.0
libtpu: 0.0.40
codegen_flags: <defaults>
</compile_context>

<pallas_src>
import functools

import jax
import jax.numpy as jnp
from jax import lax
from jax.experimental import pallas as pl
from jax.experimental.pallas import tpu as pltpu


# ----------------------------- helpers ---------------------------------------

def _round_up(x, m):
    return -(-x // m) * m


def _pick_m_tiling(m):
    """Fixed M tile (<=256) so no whole-M block ever lands in VMEM."""
    if m <= 256:
        m_pad = _round_up(m, 8)
        return m_pad, m_pad
    return _round_up(m, 256), 256


def _pick_n_tiling(n):
    if n <= 1024:
        return n
    for tn in (512, 256, 128):
        if n % tn == 0:
            return tn
    return n   # fallback; not hit for shapes in this network


# ----------------------------- Pallas kernels --------------------------------

def _mm_kernel(a_ref, b_ref, o_ref):
    o_ref[...] = jnp.dot(a_ref[...], b_ref[...],
                         preferred_element_type=jnp.float32).astype(o_ref.dtype)


def _mm_affine_kernel(a_ref, b_ref, s_ref, t_ref, o_ref, *, relu):
    acc = jnp.dot(a_ref[...], b_ref[...], preferred_element_type=jnp.float32)
    acc = acc * s_ref[...] + t_ref[...]
    if relu:
        acc = jnp.maximum(acc, 0.0)
    o_ref[...] = acc.astype(o_ref.dtype)


def _conv3x3_kernel(x_ref, w_ref, s_ref, t_ref, o_ref, *, relu):
    # x_ref: (1, H+2, W+2, Cin)  w_ref: (9, Cin, Cout)  s/t: (1, Cout)
    # o_ref: (1, H, W, Cout)
    _, H, W, Cout = o_ref.shape
    Cin = x_ref.shape[-1]

    def row(h, carry):
        acc = jnp.zeros((W, Cout), jnp.float32)
        for t in range(9):
            di, dj = t // 3, t % 3
            tap = x_ref[0, pl.ds(h + di, 1), dj:dj + W, :].reshape(W, Cin)
            acc = acc + jnp.dot(tap, w_ref[t],
                                preferred_element_type=jnp.float32)
        acc = acc * s_ref[...] + t_ref[...]
        if relu:
            acc = jnp.maximum(acc, 0.0)
        o_ref[0, pl.ds(h, 1), :, :] = acc.reshape(1, W, Cout).astype(o_ref.dtype)
        return carry

    lax.fori_loop(0, H, row, 0)


def _conv3x3_res_kernel(x_ref, w_ref, s_ref, t_ref, r_ref, o_ref, *, relu):
    _, H, W, Cout = o_ref.shape
    Cin = x_ref.shape[-1]

    def row(h, carry):
        acc = jnp.zeros((W, Cout), jnp.float32)
        for t in range(9):
            di, dj = t // 3, t % 3
            tap = x_ref[0, pl.ds(h + di, 1), dj:dj + W, :].reshape(W, Cin)
            acc = acc + jnp.dot(tap, w_ref[t],
                                preferred_element_type=jnp.float32)
        acc = acc * s_ref[...] + t_ref[...]
        res = r_ref[0, pl.ds(h, 1), :, :].reshape(W, Cout).astype(jnp.float32)
        acc = acc + res
        if relu:
            acc = jnp.maximum(acc, 0.0)
        o_ref[0, pl.ds(h, 1), :, :] = acc.reshape(1, W, Cout).astype(o_ref.dtype)
        return carry

    lax.fori_loop(0, H, row, 0)


def _max9_kernel(*refs):
    # 9 tap refs (tm, C) + 1 output ref (tm, C)
    o_ref = refs[-1]
    m = refs[0][...]
    for r in refs[1:-1]:
        m = jnp.maximum(m, r[...])
    o_ref[...] = m


# ----------------------------- Pallas wrappers --------------------------------

def pallas_matmul(a, b, scale=None, shift=None, relu=False,
                  out_dtype=jnp.float32):
    """out = (a @ b) [* scale + shift] [relu]; bf16 MXU operands, f32 accum."""
    M, K = a.shape
    K2, Nc = b.shape
    assert K == K2
    m_pad, tm = _pick_m_tiling(M)
    tn = _pick_n_tiling(Nc)
    if m_pad != M:
        a = jnp.pad(a, ((0, m_pad - M), (0, 0)))
    a = a.astype(jnp.bfloat16)
    b = b.astype(jnp.bfloat16)
    grid = (m_pad // tm, Nc // tn)

    a_spec = pl.BlockSpec((tm, K), lambda i, j: (i, 0))
    b_spec = pl.BlockSpec((K, tn), lambda i, j: (0, j))
    o_spec = pl.BlockSpec((tm, tn), lambda i, j: (i, j))

    if scale is None:
        kernel = _mm_kernel
        in_specs = [a_spec, b_spec]
        args = (a, b)
    else:
        v_spec = pl.BlockSpec((1, tn), lambda i, j: (0, j))
        kernel = functools.partial(_mm_affine_kernel, relu=relu)
        in_specs = [a_spec, b_spec, v_spec, v_spec]
        args = (a, b, scale.reshape(1, Nc).astype(jnp.float32),
                shift.reshape(1, Nc).astype(jnp.float32))

    out = pl.pallas_call(
        kernel,
        out_shape=jax.ShapeDtypeStruct((m_pad, Nc), out_dtype),
        grid=grid,
        in_specs=in_specs,
        out_specs=o_spec,
        compiler_params=pltpu.CompilerParams(
            dimension_semantics=("parallel", "parallel")),
    )(*args)
    return out[:M]


def conv_im2col_bn_relu(x_nhwc, w_oihw, scale, shift, stride, padding,
                        out_dtype=jnp.bfloat16):
    """Strided conv (used only for the 1-channel folded conv1) via im2col +
    Pallas matmul with fused BN affine + ReLU."""
    N, H, W, Cin = x_nhwc.shape
    Cout, Cin2, kh, kw = w_oihw.shape
    assert Cin == Cin2
    Ho = (H + 2 * padding - kh) // stride + 1
    Wo = (W + 2 * padding - kw) // stride + 1
    xp = jnp.pad(x_nhwc, ((0, 0), (padding, padding), (padding, padding), (0, 0)))
    patches = [xp[:, i:i + stride * Ho:stride, j:j + stride * Wo:stride, :]
               for i in range(kh) for j in range(kw)]
    A = jnp.concatenate(patches, axis=-1).reshape(N * Ho * Wo, kh * kw * Cin)
    B = jnp.transpose(w_oihw, (2, 3, 1, 0)).reshape(kh * kw * Cin, Cout)
    out = pallas_matmul(A, B, scale, shift, relu=True, out_dtype=out_dtype)
    return out.reshape(N, Ho, Wo, Cout)


def conv3x3_bn_act(x_nhwc, w_oihw, scale, shift, relu=True, residual=None,
                   out_dtype=jnp.bfloat16):
    """Direct (no im2col) 3x3/s1/p1 conv + BN affine (+ residual) (+ ReLU).

    Grid over batch; each kernel instance holds one padded image in VMEM and
    accumulates the 9 taps row by row on the MXU.
    """
    N, H, W, Cin = x_nhwc.shape
    Cout, Cin2, kh, kw = w_oihw.shape
    assert (kh, kw) == (3, 3) and Cin == Cin2
    xp = jnp.pad(x_nhwc, ((0, 0), (1, 1), (1, 1), (0, 0))).astype(jnp.bfloat16)
    wt = jnp.transpose(w_oihw, (2, 3, 1, 0)).reshape(9, Cin, Cout)
    wt = wt.astype(jnp.bfloat16)
    s2 = scale.reshape(1, Cout).astype(jnp.float32)
    t2 = shift.reshape(1, Cout).astype(jnp.float32)
    Hp, Wp = H + 2, W + 2

    in_specs = [
        pl.BlockSpec((1, Hp, Wp, Cin), lambda n: (n, 0, 0, 0)),
        pl.BlockSpec((9, Cin, Cout), lambda n: (0, 0, 0)),
        pl.BlockSpec((1, Cout), lambda n: (0, 0)),
        pl.BlockSpec((1, Cout), lambda n: (0, 0)),
    ]
    args = [xp, wt, s2, t2]
    if residual is None:
        kernel = functools.partial(_conv3x3_kernel, relu=relu)
    else:
        kernel = functools.partial(_conv3x3_res_kernel, relu=relu)
        in_specs.append(pl.BlockSpec((1, H, W, Cout), lambda n: (n, 0, 0, 0)))
        args.append(residual.astype(jnp.bfloat16))

    out = pl.pallas_call(
        kernel,
        out_shape=jax.ShapeDtypeStruct((N, H, W, Cout), out_dtype),
        grid=(N,),
        in_specs=in_specs,
        out_specs=pl.BlockSpec((1, H, W, Cout), lambda n: (n, 0, 0, 0)),
        compiler_params=pltpu.CompilerParams(
            dimension_semantics=("parallel",)),
    )(*args)
    return out


def maxpool3x3s2p1(x_nhwc):
    """MaxPool 3x3, stride 2, padding 1: 9 tap refs reduced in-kernel,
    grid tiled over M (no (9,M,C) stack, no monolithic block)."""
    N, H, W, C = x_nhwc.shape
    Ho = (H + 2 - 3) // 2 + 1
    Wo = (W + 2 - 3) // 2 + 1
    xp = jnp.pad(x_nhwc, ((0, 0), (1, 1), (1, 1), (0, 0)),
                 constant_values=float("-inf"))
    M = N * Ho * Wo
    taps = [xp[:, i:i + 2 * Ho:2, j:j + 2 * Wo:2, :].reshape(M, C)
            for i in range(3) for j in range(3)]
    if M <= 512:
        m_pad = _round_up(M, 8)
        tm = m_pad
    else:
        m_pad = _round_up(M, 512)
        tm = 512
    if m_pad != M:
        taps = [jnp.pad(t, ((0, m_pad - M), (0, 0))) for t in taps]

    spec = pl.BlockSpec((tm, C), lambda i: (i, 0))
    out = pl.pallas_call(
        _max9_kernel,
        out_shape=jax.ShapeDtypeStruct((m_pad, C), x_nhwc.dtype),
        grid=(m_pad // tm,),
        in_specs=[spec] * 9,
        out_specs=spec,
        compiler_params=pltpu.CompilerParams(
            dimension_semantics=("parallel",)),
    )(*taps)
    return out[:M].reshape(N, Ho, Wo, C)


# ----------------------------- NN building blocks -----------------------------

def bn_fold(gamma, beta, mean, var, eps=1e-5):
    scale = gamma / jnp.sqrt(var + eps)
    shift = beta - mean * scale
    return scale, shift


def _interp_matrix(out_size, in_size):
    """Bilinear interpolation matrix (align_corners=True): (out, in)."""
    if out_size == 1:
        src = jnp.zeros((1,), jnp.float32)
    else:
        src = (jnp.arange(out_size, dtype=jnp.float32)
               * (in_size - 1) / (out_size - 1))
    i0 = jnp.clip(jnp.floor(src).astype(jnp.int32), 0, in_size - 1)
    i1 = jnp.clip(i0 + 1, 0, in_size - 1)
    w1 = src - i0.astype(jnp.float32)
    w0 = 1.0 - w1
    rows = jnp.arange(out_size)
    R = jnp.zeros((out_size, in_size), jnp.float32)
    R = R.at[rows, i0].add(w0)
    R = R.at[rows, i1].add(w1)
    return R


def bilinear_upsample_nhwc(x, out_h, out_w, out_dtype=jnp.float32):
    """F.interpolate(..., mode='bilinear', align_corners=True) as two separable
    Pallas matmuls (no dummy affine operands)."""
    N, H, W, C = x.shape
    Rh = _interp_matrix(out_h, H)
    Rw = _interp_matrix(out_w, W)
    # interpolate along H: (H, N*W*C) -> (out_h, N*W*C)
    xt = x.transpose(1, 0, 2, 3).reshape(H, N * W * C)
    yh = pallas_matmul(Rh, xt, out_dtype=jnp.bfloat16)
    yh = yh.reshape(out_h, N, W, C)
    # interpolate along W: (W, N*out_h*C) -> (out_w, N*out_h*C)
    xw = yh.transpose(2, 1, 0, 3).reshape(W, N * out_h * C)
    yw = pallas_matmul(Rw, xw, out_dtype=out_dtype)
    return yw.reshape(out_w, N, out_h, C).transpose(1, 2, 0, 3)


def basic_block(x_nhwc, p):
    s1, t1 = bn_fold(*p["bn1"])
    y = conv3x3_bn_act(x_nhwc, p["conv1"], s1, t1, relu=True)
    s2, t2 = bn_fold(*p["bn2"])
    y = conv3x3_bn_act(y, p["conv2"], s2, t2, relu=True, residual=x_nhwc)
    return y


# ----------------------------- Forward pass ------------------------------------

def resnet18_x_forward(x_nchw, params):
    N, Cx, H, W = x_nchw.shape
    x = x_nchw.transpose(0, 2, 3, 1)                        # NCHW -> NHWC
    # Fold torch.cat([x, x, x], 1) into conv1: conv(cat(x,x,x), W) ==
    # conv(x, sum of the 3 replicated input-channel groups of W).
    w1 = params["conv1"]                                    # (64, 3*Cx, 7, 7)
    assert w1.shape[1] == 3 * Cx
    Cout = w1.shape[0]
    w1_folded = w1.reshape(Cout, 3, Cx, w1.shape[2], w1.shape[3]).sum(axis=1)
    s1, t1 = bn_fold(*params["bn1"])
    x = conv_im2col_bn_relu(x, w1_folded, s1, t1, stride=2, padding=3)
    x = maxpool3x3s2p1(x)
    x = basic_block(x, params["layer1"][0])
    x = basic_block(x, params["layer1"][1])
    s_e2 = x
    s_d3 = bilinear_upsample_nhwc(s_e2, H, W, out_dtype=jnp.float32)
    return s_d3.transpose(0, 3, 1, 2)                       # back to NCHW


# ----------------------------- Parameter init -----------------------------------

def init_params(key):
    def nk():
        nonlocal key
        key, sub = jax.random.split(key)
        return sub

    def conv_w(cout, cin, k):
        return 0.05 * jax.random.normal(nk(), (cout, cin, k, k), jnp.float32)

    def bn(c):
        gamma = 1.0 + 0.1 * jax.random.normal(nk(), (c,), jnp.float32)
        beta = 0.1 * jax.random.normal(nk(), (c,), jnp.float32)
        mean = 0.1 * jax.random.normal(nk(), (c,), jnp.float32)
        var = 0.5 + 0.1 * jnp.abs(jax.random.normal(nk(), (c,), jnp.float32))
        return (gamma, beta, mean, var)

    def block():
        return {"conv1": conv_w(64, 64, 3), "bn1": bn(64),
                "conv2": conv_w(64, 64, 3), "bn2": bn(64)}

    return {
        "conv1": conv_w(64, 3, 7),
        "bn1": bn(64),
        "layer1": [block(), block()],
    }


if __name__ == "__main__":
    key = jax.random.PRNGKey(0)
    pkey, xkey = jax.random.split(key)
    params = init_params(pkey)
    # Single-channel input (forward folds the cat([x,x,x],1) into conv1).
    x = jax.random.normal(xkey, (2, 1, 16, 16), jnp.float32)
    out = resnet18_x_forward(x, params)
    jax.block_until_ready(out)
    assert out.shape == (2, 64, 16, 16), out.shape
    assert bool(jnp.all(jnp.isfinite(out)))
    print("KERNEL_OK")
</pallas_src>

<mosaic_0001>
module attributes {stable_mosaic.version = 11 : i64} {
  func.func @_mm_affine_kernel(%arg0: i32, %arg1: i32, %arg2: memref<128x49xbf16, #tpu.memory_space<vmem>>, %arg3: memref<49x64xbf16, #tpu.memory_space<vmem>>, %arg4: memref<1x64xf32, #tpu.memory_space<vmem>>, %arg5: memref<1x64xf32, #tpu.memory_space<vmem>>, %arg6: memref<128x64xbf16, #tpu.memory_space<vmem>>) attributes {dimension_semantics = [#tpu.dimension_semantics<parallel>, #tpu.dimension_semantics<parallel>], iteration_bounds = array<i64: 1, 1>, scalar_prefetch = 0 : i64, scratch_operands = 0 : i64, tpu.core_type = #tpu.core_type<tc>, window_params = [{transform_indices = @transform_0, window_bounds = array<i64: 128, 49>}, {transform_indices = @transform_1, window_bounds = array<i64: 49, 64>}, {transform_indices = @transform_2, window_bounds = array<i64: 1, 64>}, {transform_indices = @transform_3, window_bounds = array<i64: 1, 64>}, {transform_indices = @transform_4, window_bounds = array<i64: 128, 64>}]} {
    %c0 = arith.constant 0 : index
    %c0_0 = arith.constant 0 : index
    %0 = vector.load %arg2[%c0, %c0_0] : memref<128x49xbf16, #tpu.memory_space<vmem>>, vector<128x49xbf16>
    %c0_1 = arith.constant 0 : index
    %c0_2 = arith.constant 0 : index
    %1 = vector.load %arg3[%c0_1, %c0_2] : memref<49x64xbf16, #tpu.memory_space<vmem>>, vector<49x64xbf16>
    %cst = arith.constant dense<0.000000e+00> : vector<128x64xf32>
    %2 = tpu.matmul %0, %1, %cst {dimension_numbers = #tpu.dot_dimension_numbers<[1], [0], [0], [1], [0, 0, 1, 1], [], []>} : vector<128x49xbf16>, vector<49x64xbf16>, vector<128x64xf32> -> vector<128x64xf32>
    %c0_3 = arith.constant 0 : index
    %c0_4 = arith.constant 0 : index
    %3 = vector.load %arg4[%c0_3, %c0_4] : memref<1x64xf32, #tpu.memory_space<vmem>>, vector<1x64xf32>
    %4 = vector.broadcast %3 : vector<1x64xf32> to vector<128x64xf32>
    %5 = arith.mulf %2, %4 : vector<128x64xf32>
    %c0_5 = arith.constant 0 : index
    %c0_6 = arith.constant 0 : index
    %6 = vector.load %arg5[%c0_5, %c0_6] : memref<1x64xf32, #tpu.memory_space<vmem>>, vector<1x64xf32>
    %7 = vector.broadcast %6 : vector<1x64xf32> to vector<128x64xf32>
    %8 = arith.addf %5, %7 : vector<128x64xf32>
    %cst_7 = arith.constant 0.000000e+00 : f32
    %9 = vector.broadcast %cst_7 : f32 to vector<128x64xf32>
    %10 = arith.maximumf %8, %9 : vector<128x64xf32>
    %11 = arith.truncf %10 : vector<128x64xf32> to vector<128x64xbf16>
    %c0_8 = arith.constant 0 : index
    %c0_9 = arith.constant 0 : index
    %12 = vector.load %arg6[%c0_8, %c0_9] : memref<128x64xbf16, #tpu.memory_space<vmem>>, vector<128x64xbf16>
    tpu.vector_store %arg6[%c0_8, %c0_9], %11 {strides = array<i32>} : memref<128x64xbf16, #tpu.memory_space<vmem>>, vector<128x64xbf16>,
    return
  }
  func.func @transform_0(%arg0: i32, %arg1: i32) -> (i32, i32) {
    %c0_i32 = arith.constant 0 : i32
    %c0_i32_0 = arith.constant 0 : i32
    return %arg0, %c0_i32 : i32, i32
  }
  func.func @transform_1(%arg0: i32, %arg1: i32) -> (i32, i32) {
    %c0_i32 = arith.constant 0 : i32
    %c0_i32_0 = arith.constant 0 : i32
    return %c0_i32, %arg1 : i32, i32
  }
  func.func @transform_2(%arg0: i32, %arg1: i32) -> (i32, i32) {
    %c0_i32 = arith.constant 0 : i32
    %c0_i32_0 = arith.constant 0 : i32
    return %c0_i32, %arg1 : i32, i32
  }
  func.func @transform_3(%arg0: i32, %arg1: i32) -> (i32, i32) {
    %c0_i32 = arith.constant 0 : i32
    %c0_i32_0 = arith.constant 0 : i32
    return %c0_i32, %arg1 : i32, i32
  }
  func.func @transform_4(%arg0: i32, %arg1: i32) -> (i32, i32) {
    %c0_i32 = arith.constant 0 : i32
    return %arg0, %arg1 : i32, i32
  }
}

</mosaic_0001>

<bundles_post_ra>
// kernel: tpu_custom_call.1
= control target key start
LH: loop header
LB: loop body
LE: loop exit
PB: predicated region body
PF: predicated region fallthrough
CT: control target
= control target key end

     0   :  { %vm127_vm0 = vcmask 1040384   ;;  %v488_v1 = vmov 0   ;;  %vm102_vm1 = vcmask 400384   ;;  %vm356_vm2 = vcmask 519168   ;;  %s664_s1 = inlined_call_operand.vmem [shape: bf16[49,64], index: 1, kind: input, shape index: {}]   ;;  %s665_s0 = inlined_call_operand.vmem [shape: bf16[128,49], index: 0, kind: input, shape index: {}]   ;;  %s666_s2 = inlined_call_operand.vmem [shape: f32[1,64], index: 2, kind: input, shape index: {}]   ;;  %s667_s3 = inlined_call_operand.vmem [shape: f32[1,64], index: 3, kind: input, shape index: {}]   ;;  %s668_s4 = inlined_call_operand.vmem [shape: bf16[128,64], index: 4, kind: output, shape index: {}]  }
   0x1   :  { %v476_v0 = vld [vmem:[%s664_s1 + $0x18] ss:$0 sps:$4 sm:$0x11]   ;;  %v129_v2 = vsel %vm127_vm0, 65535, %v488_v1  ;;  %v477_v4 = vld [vmem:[%s664_s1 + $0x10] sm:$0xff]   ;;  %v480_v5 = vld [vmem:[%s665_s0] sm:$0xff]  }
   0x2   :  { %v131_v3 = vand.u32 %v476_v0, %v129_v2  ;;  %v481_v6 = vld [vmem:[%s665_s0 + $0x20] sm:$0xff]   ;;  %v478_v7 = vld [vmem:[%s664_s1 + $0x8] sm:$0xff]   ;;  %451 = vmatprep.mubr.msk.bf16.mxu0 %vm102_vm1, %v480_v5  ;;  %v484_v11 = vld [vmem:[%s665_s0 + $0x10] sm:$0xff]  }
   0x3   :  { %459 = vmatprep.mubr.msk.bf16.mxu1 %vm102_vm1, %v481_v6  ;;  %v479_v8 = vld [vmem:[%s664_s1] sm:$0xff]   ;;  %v482_v9 = vld [vmem:[%s665_s0 + $0x8] sm:$0xff]   ;;  %v485_v12 = vld [vmem:[%s665_s0 + $0x30] sm:$0xff]  }
   0x4   :  { %443 = vmatprep.subr.bf16.mxu0 %v131_v3  ;;  %467 = vmatprep.subr.bf16.mxu1 %v131_v3  ;;  %v483_v10 = vld [vmem:[%s665_s0 + $0x28] sm:$0xff]   ;;  %v486_v13 = vld [vmem:[%s665_s0 + $0x18] sm:$0xff]   ;;  %v561_v15 = vld [vmem:[%s666_s2] ss:$0 sm:$0xff] }
   0x5   :  { %444 = vmatpush3.bf16.msra.mxu0 %v131_v3  ;;  %471 = vmatpush3.bf16.msra.mxu1 %v131_v3  ;;  %v487_v14 = vld [vmem:[%s665_s0 + $0x38] sm:$0xff]   ;;  %v566_v17 = vld [vmem:[%s667_s3] ss:$0 sm:$0xff] }
   0x6   :  { %445 = vmatprep.subr.bf16.mxu0 %v477_v4  ;;  %468 = vmatprep.subr.bf16.mxu1 %v477_v4 }
   0x9   :  { %446 = vmatpush3.bf16.msra.mxu0 %v477_v4  ;;  %472 = vmatpush3.bf16.msra.mxu1 %v477_v4 }
   0xa   :  { %447 = vmatprep.subr.bf16.mxu0 %v478_v7  ;;  %469 = vmatprep.subr.bf16.mxu1 %v478_v7 }
   0xd   :  { %448 = vmatpush3.bf16.msra.mxu0 %v478_v7  ;;  %473 = vmatpush3.bf16.msra.mxu1 %v478_v7 }
   0xe   :  { %449 = vmatprep.subr.bf16.mxu0 %v479_v8  ;;  %470 = vmatprep.subr.bf16.mxu1 %v479_v8 }
  0x11   :  { %450 = vmatpush3.bf16.msra.mxu0 %v479_v8  ;;  %474 = vmatpush3.bf16.msra.mxu1 %v479_v8 }
  0x14   :  { %452 = vmatmul.mubr.msk.bf16.vlgmr.msra.gmra.mxu0 %vm102_vm1, %v482_v9  ;;  %460 = vmatmul.mubr.msk.bf16.vlgmr.msra.gmra.mxu1 %vm102_vm1, %v483_v10 }
  0x15   :  { %455 = vmatprep.mubr.msk.bf16.mxu0 %vm102_vm1, %v484_v11  ;;  %463 = vmatprep.mubr.msk.bf16.mxu1 %vm102_vm1, %v485_v12 }
  0x1c   :  { %456 = vmatmul.mubr.msk.bf16.gmra.mxu0 %vm102_vm1, %v486_v13  ;;  %464 = vmatmul.mubr.msk.bf16.gmra.mxu1 %vm102_vm1, %v487_v14 }
  0xd4   :  { %v453_v16 = vpop.f32.mrf.mxu0  ;;  %v461_v18 = vpop.f32.mrf.mxu1 }
  0xd5   :  { %v239_v19 = vmul.f32 %v453_v16, %v561_v15  ;;  %v247_v20 = vmul.f32 %v461_v18, %v561_v15 }
  0xd6   :  { %v167_v21 = vpop.f32.mrf.mxu0  ;;  %v199_v22 = vpop.f32.mrf.mxu1 }
  0xd7   :  { %v262_v23 = vadd.f32 %v566_v17, %v239_v19  ;;  %v270_v24 = vadd.f32 %v566_v17, %v247_v20  ;;  %v237_v25 = vmul.f32 %v561_v15, %v167_v21  ;;  %v245_v26 = vmul.f32 %v561_v15, %v199_v22 }
  0xd8   :  { %v454_v27 = vpop.f32.mrf.mxu0  ;;  %v462_v28 = vpop.f32.mrf.mxu1 }
  0xd9   :  { %v278_v29 = vmax.f32 %v262_v23, 0.0  ;;  %v286_v30 = vmax.f32 %v270_v24, 0.0  ;;  %v260_v31 = vadd.f32 %v566_v17, %v237_v25  ;;  %v268_v32 = vadd.f32 %v566_v17, %v245_v26 }
  0xda   :  { %v240_v33 = vmul.f32 %v454_v27, %v561_v15  ;;  %v248_v34 = vmul.f32 %v462_v28, %v561_v15  ;;  %v170_v35 = vpop.f32.mrf.mxu0  ;;  %v202_v36 = vpop.f32.mrf.mxu1 }
  0xdb   :  { %v417_v37 = vpack.c.bf16 %v278_v29, %v278_v29  ;;  %v425_v38 = vpack.c.bf16 %v286_v30, %v286_v30  ;;  %v276_v39 = vmax.f32 %v260_v31, 0.0  ;;  %v284_v40 = vmax.f32 %v268_v32, 0.0 }
  0xdc   :  { %v263_v41 = vadd.f32 %v566_v17, %v240_v33  ;;  %v271_v42 = vadd.f32 %v566_v17, %v248_v34  ;;  %v238_v43 = vmul.f32 %v561_v15, %v170_v35  ;;  %v246_v44 = vmul.f32 %v561_v15, %v202_v36  ;;  %v457_v45 = vpop.f32.mrf.mxu0  ;;  %v465_v46 = vpop.f32.mrf.mxu1 }
  0xdd   :  { %359 = vst.msk [vmem:[%s668_s4 + $0x8] sm:$0xf] %vm356_vm2, %v417_v37  ;;  %367 = vst.msk [vmem:[%s668_s4 + $0x28] sm:$0xf] %vm356_vm2, %v425_v38  ;;  %v415_v47 = vpack.c.bf16 %v276_v39, %v276_v39  ;;  %v423_v48 = vpack.c.bf16 %v284_v40, %v284_v40  ;;  %v243_v49 = vmul.f32 %v457_v45, %v561_v15 }
  0xde   :  { %v251_v50 = vmul.f32 %v465_v46, %v561_v15  ;;  %v279_v51 = vmax.f32 %v263_v41, 0.0  ;;  %v287_v52 = vmax.f32 %v271_v42, 0.0  ;;  %v261_v53 = vadd.f32 %v566_v17, %v238_v43  ;;  %v183_v55 = vpop.f32.mrf.mxu0  ;;  %v215_v56 = vpop.f32.mrf.mxu1 }
  0xdf   :  { %v269_v54 = vadd.f32 %v566_v17, %v246_v44  ;;  %357 = vst.msk [vmem:[%s668_s4] sm:$0xf] %vm356_vm2, %v415_v47  ;;  %365 = vst.msk [vmem:[%s668_s4 + $0x20] sm:$0xf] %vm356_vm2, %v423_v48  ;;  %v266_v57 = vadd.f32 %v566_v17, %v243_v49  ;;  %v241_v59 = vmul.f32 %v561_v15, %v183_v55 }
  0xe0   :  { %v274_v58 = vadd.f32 %v566_v17, %v251_v50  ;;  %v249_v60 = vmul.f32 %v561_v15, %v215_v56  ;;  %v418_v61 = vpack.c.bf16 %v279_v51, %v279_v51  ;;  %v426_v62 = vpack.c.bf16 %v287_v52, %v287_v52  ;;  %v458_v1 = vpop.f32.mrf.mxu0  ;;  %v466_v2 = vpop.f32.mrf.mxu1 }
  0xe1   :  { %v277_v63 = vmax.f32 %v261_v53, 0.0  ;;  %v285_v0 = vmax.f32 %v269_v54, 0.0  ;;  %v282_v3 = vmax.f32 %v266_v57, 0.0  ;;  %v264_v5 = vadd.f32 %v566_v17, %v241_v59 }
  0xe2   :  { %v290_v4 = vmax.f32 %v274_v58, 0.0  ;;  %v272_v6 = vadd.f32 %v566_v17, %v249_v60  ;;  %360 = vst.msk [vmem:[%s668_s4 + $0xc] sm:$0xf] %vm356_vm2, %v418_v61  ;;  %368 = vst.msk [vmem:[%s668_s4 + $0x2c] sm:$0xf] %vm356_vm2, %v426_v62  ;;  %v244_v9 = vmul.f32 %v458_v1, %v561_v15  ;;  %v252_v10 = vmul.f32 %v466_v2, %v561_v15  ;;  %v186_v11 = vpop.f32.mrf.mxu0  ;;  %v218_v12 = vpop.f32.mrf.mxu1 }
  0xe3   :  { %v416_v7 = vpack.c.bf16 %v277_v63, %v277_v63  ;;  %v424_v8 = vpack.c.bf16 %v285_v0, %v285_v0  ;;  %v421_v13 = vpack.c.bf16 %v282_v3, %v282_v3  ;;  %v280_v16 = vmax.f32 %v264_v5, 0.0 }
  0xe4   :  { %v429_v14 = vpack.c.bf16 %v290_v4, %v290_v4  ;;  %v288_v18 = vmax.f32 %v272_v6, 0.0  ;;  %v267_v19 = vadd.f32 %v566_v17, %v244_v9  ;;  %v275_v20 = vadd.f32 %v566_v17, %v252_v10 }
  0xe5   :  { %358 = vst.msk [vmem:[%s668_s4 + $0x4] sm:$0xf] %vm356_vm2, %v416_v7  ;;  %366 = vst.msk [vmem:[%s668_s4 + $0x24] sm:$0xf] %vm356_vm2, %v424_v8  ;;  %v242_v21 = vmul.f32 %v561_v15, %v186_v11  ;;  %v250_v22 = vmul.f32 %v561_v15, %v218_v12  ;;  %v419_v23 = vpack.c.bf16 %v280_v16, %v280_v16 }
  0xe6   :  { %363 = vst.msk [vmem:[%s668_s4 + $0x18] sm:$0xf] %vm356_vm2, %v421_v13  ;;  %371 = vst.msk [vmem:[%s668_s4 + $0x38] sm:$0xf] %vm356_vm2, %v429_v14  ;;  %v427_v24 = vpack.c.bf16 %v288_v18, %v288_v18  ;;  %v283_v25 = vmax.f32 %v267_v19, 0.0  ;;  %v291_v26 = vmax.f32 %v275_v20, 0.0 }
  0xe7   :  { %v265_v27 = vadd.f32 %v566_v17, %v242_v21  ;;  %v273_v28 = vadd.f32 %v566_v17, %v250_v22  ;;  %361 = vst.msk [vmem:[%s668_s4 + $0x10] sm:$0xf] %vm356_vm2, %v419_v23 }
  0xe8   :  { %369 = vst.msk [vmem:[%s668_s4 + $0x30] sm:$0xf] %vm356_vm2, %v427_v24  ;;  %v422_v15 = vpack.c.bf16 %v283_v25, %v283_v25  ;;  %v430_v29 = vpack.c.bf16 %v291_v26, %v291_v26 }
  0xe9   :  { %v281_v30 = vmax.f32 %v265_v27, 0.0  ;;  %v289_v31 = vmax.f32 %v273_v28, 0.0 }
  0xea   :  { %364 = vst.msk [vmem:[%s668_s4 + $0x1c] sm:$0xf] %vm356_vm2, %v422_v15  ;;  %372 = vst.msk [vmem:[%s668_s4 + $0x3c] sm:$0xf] %vm356_vm2, %v430_v29 }
  0xeb   :  { %v420_v17 = vpack.c.bf16 %v281_v30, %v281_v30  ;;  %v428_v32 = vpack.c.bf16 %v289_v31, %v289_v31 }
  0xed   :  { %362 = vst.msk [vmem:[%s668_s4 + $0x14] sm:$0xf] %vm356_vm2, %v420_v17  ;;  %370 = vst.msk [vmem:[%s668_s4 + $0x34] sm:$0xf] %vm356_vm2, %v428_v32 }

</bundles_post_ra>
